<compile_context>
chip_gen: v7x
topology: tpu7x:2x2x1
jax: 0.10.0
libtpu: 0.0.40
codegen_flags: <defaults>
</compile_context>

<pallas_src>
import jax
import jax.numpy as jnp
import numpy as np
from jax.experimental import pallas as pl
from jax.experimental.pallas import tpu as pltpu  # noqa: F401  (TPU backend assumed)

# ---- model hyper-parameters (synthetic, small) -----------------------------
B = 2              # batch
C_IN = 4           # input channels
H = W = 16         # spatial
K = 3              # conv kernel size (padding=1 -> "same")
F = 32             # backbone feature dim
NUM_CLASSES = 10   # classifier output dim

BH = B * H          # 32   rows of the in-kernel layout  (b, i)
WC = W * C_IN       # 64   cols of the input layout      (j, c)
WF = W * F          # 512  cols of the activation layout (j, f)
KKC = K * K * C_IN  # 36   (reference im2col only)


def _round_up(x, m):
    return (x + m - 1) // m * m


NC_PAD = _round_up(NUM_CLASSES, 128)   # 10 -> 128 (lane-dense output)


# ---- Pallas kernel: fused conv(3x3) + ReLU + GAP + Linear -------------------
def facemodel_kernel(y_ref, tn_ref, tz_ref, tp_ref, bconv_ref, pool_ref,
                     wbig_ref, bcls_ref, out_ref):
    # y_ref     : [BH, WC]      f32   input, rows (b,i), cols (j,c)
    # tn/tz/tp  : [WC, WF]      bf16  block-Toeplitz conv weights for di=0,1,2
    # bconv_ref : [1, WF]       f32   conv bias tiled over j
    # pool_ref  : [B, BH]       bf16  per-batch row-averaging matrix (1/(H*W) folded)
    # wbig_ref  : [WF, NC_PAD]  bf16  classifier weight tiled over j, class-padded
    # bcls_ref  : [1, NC_PAD]   f32
    # out_ref   : [B, NC_PAD]   f32
    bf = jnp.bfloat16
    y = y_ref[...]                                                  # [32, 64] f32

    # Row index i within each image (for vertical-tap edge masking).
    i_idx = jax.lax.broadcasted_iota(jnp.int32, (BH, WC), 0) % H

    # Vertical taps: shifted[r] = y[r +/- 1]; zero where i +/- 1 falls off the
    # image (also kills cross-batch rows).  Horizontal taps / zero padding are
    # encoded inside the Toeplitz matrices, so no lane shifts are needed.
    zero_row = jnp.zeros((1, WC), y.dtype)
    y_m1 = jnp.concatenate([zero_row, y[:-1, :]], axis=0)           # x[.., i-1, ..]
    y_m1 = jnp.where(i_idx >= 1, y_m1, 0.0)
    y_p1 = jnp.concatenate([y[1:, :], zero_row], axis=0)            # x[.., i+1, ..]
    y_p1 = jnp.where(i_idx <= H - 2, y_p1, 0.0)

    # Conv2d(3x3, pad=1) as three MXU matmuls (bf16 operands, f32 accumulation),
    # plus the lane-dense bias add; ReLU on the VPU.
    act = (bconv_ref[...]
           + jnp.dot(y_m1.astype(bf), tn_ref[...], preferred_element_type=jnp.float32)
           + jnp.dot(y.astype(bf),    tz_ref[...], preferred_element_type=jnp.float32)
           + jnp.dot(y_p1.astype(bf), tp_ref[...], preferred_element_type=jnp.float32))
    act = jnp.maximum(act, 0.0)                                     # [BH, WF] f32

    # Global average pool (over i) as a bf16 MXU matmul; 1/(H*W) folded into pool.
    stage1 = jnp.dot(pool_ref[...], act.astype(bf),
                     preferred_element_type=jnp.float32)            # [B, WF] f32

    # Remaining sum over j is fused with the classifier: wbig is wcls tiled over j.
    logits = jnp.dot(stage1.astype(bf), wbig_ref[...],
                     preferred_element_type=jnp.float32) + bcls_ref[...]
    out_ref[...] = logits                                           # [B, NC_PAD]


# ---- one-time packing of the (frozen) parameters ----------------------------
def prepare_params(params):
    """Hoisted preprocessing: pack frozen backbone + classifier weights once."""
    wconv, bconv, wcls, bcls = params
    wconv_np = np.asarray(wconv, np.float32)    # [F, C, K, K]
    bconv_np = np.asarray(bconv, np.float32)    # [F]
    wcls_np = np.asarray(wcls, np.float32)      # [F, NUM_CLASSES]
    bcls_np = np.asarray(bcls, np.float32)      # [NUM_CLASSES]

    # Block-Toeplitz conv weights: T_di[(j',c), (j,f)] = wconv[f, c, di, j'-j+1]
    # for j'-j in {-1,0,1}; zero otherwise (implements horizontal zero padding).
    def build_toeplitz(di):
        t = np.zeros((WC, WF), np.float32)
        for j in range(W):
            for dj in range(K):
                jp = j + dj - 1
                if 0 <= jp < W:
                    t[jp * C_IN:(jp + 1) * C_IN, j * F:(j + 1) * F] = \
                        wconv_np[:, :, di, dj].T            # [C, F]
        return jnp.asarray(t, jnp.bfloat16)

    t_m1 = build_toeplitz(0)   # pairs with x[.., i-1, ..]
    t_z = build_toeplitz(1)    # pairs with x[.., i,   ..]
    t_p1 = build_toeplitz(2)   # pairs with x[.., i+1, ..]

    bconv_row = jnp.asarray(np.tile(bconv_np, W)[None, :], jnp.float32)   # [1, WF]

    # Per-batch row-averaging matrix (exact in bf16: 1/256 is a power of two).
    pool_rows = np.kron(np.eye(B, dtype=np.float32),
                        np.ones((1, H), np.float32)) * (1.0 / float(H * W))
    pool_rows = jnp.asarray(pool_rows, jnp.bfloat16)                       # [B, BH]

    # Classifier weight tiled over j (fuses the sum over j with the classifier),
    # zero-padded to a lane-dense class width.
    wbig = np.zeros((WF, NC_PAD), np.float32)
    wbig[:, :NUM_CLASSES] = np.tile(wcls_np, (W, 1))
    wbig = jnp.asarray(wbig, jnp.bfloat16)                                 # [WF, NC_PAD]

    bcls_row = np.zeros((1, NC_PAD), np.float32)
    bcls_row[0, :NUM_CLASSES] = bcls_np
    bcls_row = jnp.asarray(bcls_row, jnp.float32)

    return t_m1, t_z, t_p1, bconv_row, pool_rows, wbig, bcls_row


# ---- forward wrapper ---------------------------------------------------------
def _full_spec(shape):
    return pl.BlockSpec(shape, lambda: tuple(0 for _ in shape))


@jax.jit
def face_model_forward(x_nchw, packed):
    """FaceModel.forward: x [B, C, H, W] -> logits [B, NUM_CLASSES]."""
    t_m1, t_z, t_p1, bconv_row, pool_rows, wbig, bcls_row = packed

    # Only per-call host-side work: NCHW -> (b,i) x (j,c) slab, ~16 KB.
    y = jnp.transpose(x_nchw, (0, 2, 3, 1)).reshape(BH, WC).astype(jnp.float32)

    cost = pl.CostEstimate(
        flops=2 * (3 * BH * WC * WF + B * BH * WF + B * WF * NC_PAD),
        transcendentals=0,
        bytes_accessed=(BH * WC * 4 + 3 * WC * WF * 2 + WF * 4 + B * BH * 2
                        + WF * NC_PAD * 2 + NC_PAD * 4 + B * NC_PAD * 4),
    )

    logits_pad = pl.pallas_call(
        facemodel_kernel,
        out_shape=jax.ShapeDtypeStruct((B, NC_PAD), jnp.float32),
        grid=(),
        in_specs=[
            _full_spec((BH, WC)),
            _full_spec((WC, WF)),
            _full_spec((WC, WF)),
            _full_spec((WC, WF)),
            _full_spec((1, WF)),
            _full_spec((B, BH)),
            _full_spec((WF, NC_PAD)),
            _full_spec((1, NC_PAD)),
        ],
        out_specs=_full_spec((B, NC_PAD)),
        cost_estimate=cost,
    )(y, t_m1, t_z, t_p1, bconv_row, pool_rows, wbig, bcls_row)

    # Slice off the zero-padded class columns.
    return logits_pad[:, :NUM_CLASSES]


# ---- reference-only im2col (not on the forward path) ------------------------
def _im2col_nhwc(x_nhwc, k):
    """[B,H,W,C] -> [B*H*W, k*k*C] patches (padding=1, 'same')."""
    b, h, w, c = x_nhwc.shape
    pad = k // 2
    xp = jnp.pad(x_nhwc, ((0, 0), (pad, pad), (pad, pad), (0, 0)))
    cols = []
    for di in range(k):
        for dj in range(k):
            cols.append(xp[:, di:di + h, dj:dj + w, :])   # [B,H,W,C]
    patches = jnp.stack(cols, axis=-2)                    # [B,H,W,k*k,C]
    return patches.reshape(b * h * w, k * k * c)


def init_params(key):
    """Deterministic synthetic parameters (backbone frozen in the original)."""
    k1, k2, k3, k4 = jax.random.split(key, 4)
    wconv = jax.random.normal(k1, (F, C_IN, K, K), jnp.float32) * 0.1
    bconv = jax.random.normal(k2, (F,), jnp.float32) * 0.01
    wcls = jax.random.normal(k3, (F, NUM_CLASSES), jnp.float32) * 0.1
    bcls = jax.random.normal(k4, (NUM_CLASSES,), jnp.float32) * 0.01
    return wconv, bconv, wcls, bcls


if __name__ == "__main__":
    key = jax.random.PRNGKey(0)
    kx, kp = jax.random.split(key)
    x = jax.random.normal(kx, (B, C_IN, H, W), jnp.float32)   # NCHW like PyTorch
    params = init_params(kp)
    packed = prepare_params(params)                           # hoisted, runs once

    logits = face_model_forward(x, packed)
    jax.block_until_ready(logits)
    assert logits.shape == (B, NUM_CLASSES) and logits.dtype == jnp.float32

    # Pure-JAX reference of the same math (independent im2col path), applying the
    # same bf16 operand quantization the kernel uses (f32 accumulation everywhere).
    wconv, bconv, wcls, bcls = params
    x_nhwc = jnp.transpose(x, (0, 2, 3, 1))
    patches = _im2col_nhwc(x_nhwc, K)                               # [BHW, KKC]
    wconv_mat = jnp.transpose(wconv, (2, 3, 1, 0)).reshape(KKC, F)
    p_bf = patches.astype(jnp.bfloat16).astype(jnp.float32)
    w_bf = wconv_mat.astype(jnp.bfloat16).astype(jnp.float32)
    act_ref = jnp.maximum(p_bf @ w_bf + bconv[None, :], 0.0)        # [BHW, F]
    act_bf = act_ref.astype(jnp.bfloat16).astype(jnp.float32)
    s1 = act_bf.reshape(B, H, W, F).sum(axis=1) / float(H * W)      # [B, W, F]
    s1_bf = s1.astype(jnp.bfloat16).astype(jnp.float32)
    wcls_bf = wcls.astype(jnp.bfloat16).astype(jnp.float32)
    ref = jnp.einsum("bwf,fk->bk", s1_bf, wcls_bf) + bcls[None, :]
    assert jnp.allclose(logits, ref, atol=2e-3, rtol=2e-3), \
        float(jnp.max(jnp.abs(logits - ref)))

    # TODO(synk): FaceX-Zoo margin-based classifier heads (e.g. MV-Softmax) also
    # consume labels; here the head is a plain linear classifier since forward()
    # only receives `feat`.
    print("KERNEL_OK")
</pallas_src>

<mosaic_0001>
module attributes {stable_mosaic.version = 11 : i64} {
  func.func @facemodel_kernel(%arg0: memref<32x64xf32, #tpu.memory_space<vmem>>, %arg1: memref<64x512xbf16, #tpu.memory_space<vmem>>, %arg2: memref<64x512xbf16, #tpu.memory_space<vmem>>, %arg3: memref<64x512xbf16, #tpu.memory_space<vmem>>, %arg4: memref<1x512xf32, #tpu.memory_space<vmem>>, %arg5: memref<2x32xbf16, #tpu.memory_space<vmem>>, %arg6: memref<512x128xbf16, #tpu.memory_space<vmem>>, %arg7: memref<1x128xf32, #tpu.memory_space<vmem>>, %arg8: memref<2x128xf32, #tpu.memory_space<vmem>>) attributes {dimension_semantics = [], scalar_prefetch = 0 : i64, scratch_operands = 0 : i64, tpu.core_type = #tpu.core_type<tc>} {
    %c0 = arith.constant 0 : index
    %c0_0 = arith.constant 0 : index
    %0 = vector.load %arg0[%c0, %c0_0] : memref<32x64xf32, #tpu.memory_space<vmem>>, vector<32x64xf32>
    %1 = tpu.iota {dimensions = array<i32: 0>} : vector<32x64xi32>
    %c16_i32 = arith.constant 16 : i32
    %c0_i32 = arith.constant 0 : i32
    %2 = arith.cmpi eq, %c16_i32, %c0_i32 : i32
    %c1_i32 = arith.constant 1 : i32
    %3 = arith.select %2, %c1_i32, %c16_i32 : i32
    %4 = vector.broadcast %3 : i32 to vector<32x64xi32>
    %5 = arith.remsi %1, %4 : vector<32x64xi32>
    %c0_i32_1 = arith.constant 0 : i32
    %6 = vector.broadcast %c0_i32_1 : i32 to vector<32x64xi32>
    %7 = arith.cmpi ne, %5, %6 : vector<32x64xi32>
    %c0_i32_2 = arith.constant 0 : i32
    %8 = vector.broadcast %c0_i32_2 : i32 to vector<32x64xi32>
    %9 = arith.cmpi slt, %5, %8 : vector<32x64xi32>
    %c0_i32_3 = arith.constant 0 : i32
    %10 = arith.cmpi slt, %3, %c0_i32_3 : i32
    %11 = vector.broadcast %10 : i1 to vector<32x64xi1>
    %12 = vector.broadcast %11 : vector<32x64xi1> to vector<32x64xi1>
    %13 = arith.xori %9, %12 : vector<32x64xi1>
    %14 = arith.andi %13, %7 : vector<32x64xi1>
    %15 = vector.broadcast %3 : i32 to vector<32x64xi32>
    %16 = arith.addi %5, %15 : vector<32x64xi32>
    %17 = arith.select %14, %16, %5 : vector<32x64xi1>, vector<32x64xi32>
    %cst = arith.constant 0.000000e+00 : f32
    %18 = vector.broadcast %cst : f32 to vector<1x64xf32>
    %19 = vector.extract_strided_slice %0 {offsets = [0, 0], sizes = [31, 64], strides = [1, 1]} : vector<32x64xf32> to vector<31x64xf32>
    %20 = tpu.concatenate %18, %19 in 0 : vector<1x64xf32>, vector<31x64xf32> -> vector<32x64xf32>
    %c1_i32_4 = arith.constant 1 : i32
    %21 = vector.broadcast %c1_i32_4 : i32 to vector<32x64xi32>
    %22 = arith.cmpi sge, %17, %21 : vector<32x64xi32>
    %cst_5 = arith.constant 0.000000e+00 : f32
    %23 = vector.broadcast %cst_5 : f32 to vector<32x64xf32>
    %24 = arith.select %22, %20, %23 : vector<32x64xi1>, vector<32x64xf32>
    %25 = vector.extract_strided_slice %0 {offsets = [1, 0], sizes = [31, 64], strides = [1, 1]} : vector<32x64xf32> to vector<31x64xf32>
    %26 = tpu.concatenate %25, %18 in 0 : vector<31x64xf32>, vector<1x64xf32> -> vector<32x64xf32>
    %c14_i32 = arith.constant 14 : i32
    %27 = vector.broadcast %c14_i32 : i32 to vector<32x64xi32>
    %28 = arith.cmpi sle, %17, %27 : vector<32x64xi32>
    %cst_6 = arith.constant 0.000000e+00 : f32
    %29 = vector.broadcast %cst_6 : f32 to vector<32x64xf32>
    %30 = arith.select %28, %26, %29 : vector<32x64xi1>, vector<32x64xf32>
    %c0_7 = arith.constant 0 : index
    %c0_8 = arith.constant 0 : index
    %31 = vector.load %arg4[%c0_7, %c0_8] : memref<1x512xf32, #tpu.memory_space<vmem>>, vector<1x512xf32>
    %32 = arith.truncf %24 : vector<32x64xf32> to vector<32x64xbf16>
    %c0_9 = arith.constant 0 : index
    %c0_10 = arith.constant 0 : index
    %33 = vector.load %arg1[%c0_9, %c0_10] : memref<64x512xbf16, #tpu.memory_space<vmem>>, vector<64x512xbf16>
    %cst_11 = arith.constant dense<0.000000e+00> : vector<32x512xf32>
    %34 = tpu.matmul %32, %33, %cst_11 {dimension_numbers = #tpu.dot_dimension_numbers<[1], [0], [0], [1], [0, 0, 1, 1], [], []>} : vector<32x64xbf16>, vector<64x512xbf16>, vector<32x512xf32> -> vector<32x512xf32>
    %35 = vector.broadcast %31 : vector<1x512xf32> to vector<32x512xf32>
    %36 = arith.addf %35, %34 : vector<32x512xf32>
    %37 = arith.truncf %0 : vector<32x64xf32> to vector<32x64xbf16>
    %c0_12 = arith.constant 0 : index
    %c0_13 = arith.constant 0 : index
    %38 = vector.load %arg2[%c0_12, %c0_13] : memref<64x512xbf16, #tpu.memory_space<vmem>>, vector<64x512xbf16>
    %cst_14 = arith.constant dense<0.000000e+00> : vector<32x512xf32>
    %39 = tpu.matmul %37, %38, %cst_14 {dimension_numbers = #tpu.dot_dimension_numbers<[1], [0], [0], [1], [0, 0, 1, 1], [], []>} : vector<32x64xbf16>, vector<64x512xbf16>, vector<32x512xf32> -> vector<32x512xf32>
    %40 = arith.addf %36, %39 : vector<32x512xf32>
    %41 = arith.truncf %30 : vector<32x64xf32> to vector<32x64xbf16>
    %c0_15 = arith.constant 0 : index
    %c0_16 = arith.constant 0 : index
    %42 = vector.load %arg3[%c0_15, %c0_16] : memref<64x512xbf16, #tpu.memory_space<vmem>>, vector<64x512xbf16>
    %cst_17 = arith.constant dense<0.000000e+00> : vector<32x512xf32>
    %43 = tpu.matmul %41, %42, %cst_17 {dimension_numbers = #tpu.dot_dimension_numbers<[1], [0], [0], [1], [0, 0, 1, 1], [], []>} : vector<32x64xbf16>, vector<64x512xbf16>, vector<32x512xf32> -> vector<32x512xf32>
    %44 = arith.addf %40, %43 : vector<32x512xf32>
    %cst_18 = arith.constant 0.000000e+00 : f32
    %45 = vector.broadcast %cst_18 : f32 to vector<32x512xf32>
    %46 = arith.maximumf %44, %45 : vector<32x512xf32>
    %c0_19 = arith.constant 0 : index
    %c0_20 = arith.constant 0 : index
    %47 = vector.load %arg5[%c0_19, %c0_20] : memref<2x32xbf16, #tpu.memory_space<vmem>>, vector<2x32xbf16>
    %48 = arith.truncf %46 : vector<32x512xf32> to vector<32x512xbf16>
    %cst_21 = arith.constant dense<0.000000e+00> : vector<2x512xf32>
    %49 = tpu.matmul %47, %48, %cst_21 {dimension_numbers = #tpu.dot_dimension_numbers<[1], [0], [0], [1], [0, 0, 1, 1], [], []>} : vector<2x32xbf16>, vector<32x512xbf16>, vector<2x512xf32> -> vector<2x512xf32>
    %50 = arith.truncf %49 : vector<2x512xf32> to vector<2x512xbf16>
    %c0_22 = arith.constant 0 : index
    %c0_23 = arith.constant 0 : index
    %51 = vector.load %arg6[%c0_22, %c0_23] : memref<512x128xbf16, #tpu.memory_space<vmem>>, vector<512x128xbf16>
    %cst_24 = arith.constant dense<0.000000e+00> : vector<2x128xf32>
    %52 = tpu.matmul %50, %51, %cst_24 {dimension_numbers = #tpu.dot_dimension_numbers<[1], [0], [0], [1], [0, 0, 1, 1], [], []>} : vector<2x512xbf16>, vector<512x128xbf16>, vector<2x128xf32> -> vector<2x128xf32>
    %c0_25 = arith.constant 0 : index
    %c0_26 = arith.constant 0 : index
    %53 = vector.load %arg7[%c0_25, %c0_26] : memref<1x128xf32, #tpu.memory_space<vmem>>, vector<1x128xf32>
    %54 = vector.broadcast %53 : vector<1x128xf32> to vector<2x128xf32>
    %55 = arith.addf %52, %54 : vector<2x128xf32>
    %c0_27 = arith.constant 0 : index
    %c0_28 = arith.constant 0 : index
    %56 = vector.load %arg8[%c0_27, %c0_28] : memref<2x128xf32, #tpu.memory_space<vmem>>, vector<2x128xf32>
    tpu.vector_store %arg8[%c0_27, %c0_28], %55 {strides = array<i32>} : memref<2x128xf32, #tpu.memory_space<vmem>>, vector<2x128xf32>,
    return
  }
}

</mosaic_0001>

<bundles_post_ra>
// kernel: face_model_forward.1
= control target key start
LH: loop header
LB: loop body
LE: loop exit
PB: predicated region body
PF: predicated region fallthrough
CT: control target
= control target key end

     0   :  { %13 = vsyncpa [#allocation3], 0  ;;  %s2048_s0 = inlined_call_operand.vmem [shape: f32[32,64], index: 0, kind: input, shape index: {}]   ;;  %s2049_s1 = inlined_call_operand.vmem [shape: bf16[64,512], index: 1, kind: input, shape index: {}]   ;;  %s2050_s2 = inlined_call_operand.vmem [shape: bf16[64,512], index: 2, kind: input, shape index: {}]   ;;  %s2051_s3 = inlined_call_operand.hbm [shape: bf16[64,512], index: 3, kind: input, shape index: {}]   ;;  %s2052_s4 = inlined_call_operand.vmem [shape: f32[1,512], index: 4, kind: input, shape index: {}]   ;;  %s2053_s5 = inlined_call_operand.vmem [shape: bf16[2,32], index: 5, kind: input, shape index: {}]   ;;  %s2054_s6 = inlined_call_operand.vmem [shape: bf16[512,128], index: 6, kind: input, shape index: {}]   ;;  %s2055_s7 = inlined_call_operand.vmem [shape: f32[1,128], index: 7, kind: input, shape index: {}]   ;;  %s2056_s8 = inlined_call_operand.hbm [shape: f32[2,128], index: 8, kind: output, shape index: {}]  }
   0x1   :  { %14 = vsyncpa [#allocation4], 0  ;;  %s1667_s27 = smov [#allocation2]   ;;  %s1619_s9 = scalar_lea.hbm %s2051_s3, 2048 }
   0x2   :  { %s26_s28 = sshll.u32 %s1667_s27, 4  ;;  %p1620_p0 = scmp.ne.s32.totalorder %s2051_s3, %s1619_s9  ;;  %s27_s28 = int_to_ptr.vmem [resolvable:$true] %s26_s28 }
   0x3   :  { %p1623_p1 = scmp.lt.u32.totalorder %s1619_s9, %s2051_s3 }
   0x5   :  { %p1625_p2 = pnand %p1623_p1, %p1620_p0 }
   0x7   :  { %1628 = shalt.err (!%p1625_p2)
}
   0x8   :  { %s1629_s14 = scalar_lea.vmem %s27_s28, 2048  ;;  %p1634_p4 = scmp.lt.s32.totalorder %s27_s28, %s27_s28 }
   0x9   :  { %p1630_p3 = scmp.ne.s32.totalorder %s27_s28, %s1629_s14  ;;  %p1635_p5 = scmp.lt.s32.totalorder %s1629_s14, %s1629_s14 }
   0xb   :  { %p1636_p6 = por %p1635_p5, %p1634_p4 }
   0xd   :  { %p1637_p7 = pnand %p1636_p6, %p1630_p3 }
   0xf   :  { %1640 = shalt.err (!%p1637_p7)
}
  0x10   :  { %s1668_s15 = smov 256   ;;  %s1669_s16 = smov 16  }
  0x11   :  { %32 = dma.hbm_to_vmem [thread:$0]  %s2051_s3, 2048, %s27_s28, [#allocation3], %s1668_s15, %s1668_s15, %s1669_s16  }
  0x12   :  { %1663 = dma.done.wait [#allocation3], 2048  }
  0x13   :  { %1664 = vsyncadd [#allocation3], 4294965248  ;;  %v1670_v0 = vmov 0   ;;  %v49_v1 = vlaneseq  ;;  %v1515_v2 = vld [vmem:[%s2049_s1 + $0x4] ss:$16 sps:$4 sm:$0xff]   ;;  %vm106_vm0 = vcmask 1040384  }
  0x14   :  { %286 = vmatprep.mubr.bf16.mxu0 %v1670_v0  ;;  %339 = vmatprep.mubr.bf16.mxu1 %v1670_v0  ;;  %v1517_v3 = vld [vmem:[%s2049_s1 + $0xc] ss:$16 sps:$4 sm:$0xff]   ;;  %v1519_v4 = vld [vmem:[%s2049_s1] ss:$16 sps:$4 sm:$0xff]   ;;  %v1520_v5 = vld [vmem:[%s2049_s1 + $0x8] ss:$16 sps:$4 sm:$0xff]  }
  0x15   :  { %254 = vmatprep.subr.bf16.mxu0 %v1515_v2  ;;  %v1743_v6 = vshrl.u32 %v49_v1, 7  ;;  %307 = vmatprep.subr.bf16.mxu1 %v1517_v3  ;;  %v1521_v7 = vld [vmem:[%s2049_s1 + $0x24] ss:$16 sps:$4 sm:$0xff]   ;;  %v1523_v8 = vld [vmem:[%s2049_s1 + $0x2c] ss:$16 sps:$4 sm:$0xff]   ;;  %vm247_vm2 = vcmask 523264  }
  0x16   :  { %255 = vmatpush1.bf16.msra.mxu0 %v1519_v4  ;;  %308 = vmatpush1.bf16.msra.mxu1 %v1520_v5  ;;  %v1525_v9 = vld [vmem:[%s2049_s1 + $0x20] ss:$16 sps:$4 sm:$0xff]   ;;  %v1526_v10 = vld [vmem:[%s2049_s1 + $0x28] ss:$16 sps:$4 sm:$0xff]   ;;  %v1527_v11 = vld [vmem:[%s2049_s1 + $0x44] ss:$16 sps:$4 sm:$0xff]  }
  0x17   :  { %256 = vmatprep.subr.bf16.mxu0 %v1521_v7  ;;  %309 = vmatprep.subr.bf16.mxu1 %v1523_v8  ;;  %v58_v12 = vand.u32 15, %v1743_v6  ;;  %v1529_v13 = vld [vmem:[%s2049_s1 + $0x4c] ss:$16 sps:$4 sm:$0xff]   ;;  %v1531_v14 = vld [vmem:[%s2049_s1 + $0x40] ss:$16 sps:$4 sm:$0xff]   ;;  %v52_v19 = vadd.s32 16, %v1743_v6 }
  0x18   :  { %v1532_v15 = vld [vmem:[%s2049_s1 + $0x48] ss:$16 sps:$4 sm:$0xff]   ;;  %v1533_v16 = vld [vmem:[%s2049_s1 + $0x64] ss:$16 sps:$4 sm:$0xff]   ;;  %v1535_v17 = vld [vmem:[%s2049_s1 + $0x6c] ss:$16 sps:$4 sm:$0xff]  }
  0x19   :  { %v1779_v18 = vld [vmem:[%s2048_s0] sm:$0xff]  ;;  %v1785_v20 = vld [vmem:[%s2048_s0 + $0x8] sm:$0xff]  ;;  %vm119_vm1 = vcmp.ge.s32.totalorder %v58_v12, 1  ;;  %v72_v30 = vand.u32 15, %v52_v19  ;;  %v1818_v36 = vld [vmem:[%s2048_s0 + $0x10] sm:$0xff]  ;;  %v51_v41 = vadd.s32 8, %v1743_v6 }
  0x1a   :  { %257 = vmatpush1.bf16.msra.mxu0 %v1525_v9  ;;  %310 = vmatpush1.bf16.msra.mxu1 %v1526_v10  ;;  %v107_v21 = vrot.slane %v1779_v18, 7  ;;  %v1537_v22 = vld [vmem:[%s2049_s1 + $0x60] ss:$16 sps:$4 sm:$0xff]   ;;  %v1538_v23 = vld [vmem:[%s2049_s1 + $0x68] ss:$16 sps:$4 sm:$0xff]   ;;  %v108_v24 = vrot.slane %v1785_v20, 7  ;;  %v397_v7 = vpack.c.bf16 %v1785_v20, %v1779_v18 }
  0x1b   :  { %258 = vmatprep.subr.bf16.mxu0 %v1527_v11  ;;  %311 = vmatprep.subr.bf16.mxu1 %v1529_v13  ;;  %v1541_v26 = vld [vmem:[%s2050_s2 + $0x4] ss:$16 sps:$4 sm:$0xff]   ;;  %v1544_v29 = vld [vmem:[%s2050_s2 + $0xc] ss:$16 sps:$4 sm:$0xff]   ;;  %v1539_v32 = vld [vmem:[%s2050_s2] ss:$16 sps:$4 sm:$0xff]  }
  0x1c   :  { %v118_v25 = vsel %vm106_vm0, 0.0, %v107_v21  ;;  %v109_v27 = vsel %vm106_vm0, %v107_v21, %v108_v24  ;;  %v1542_v33 = vld [vmem:[%s2050_s2 + $0x8] ss:$16 sps:$4 sm:$0xff]   ;;  %v1547_v34 = vld [vmem:[%s2050_s2 + $0x24] ss:$16 sps:$4 sm:$0xff]   ;;  %v110_v38 = vrot.slane %v1818_v36, 7 }
  0x1d   :  { %v123_v28 = vsel %vm119_vm1, %v118_v25, 0.0  ;;  %v1550_v35 = vld [vmem:[%s2050_s2 + $0x2c] ss:$16 sps:$4 sm:$0xff]   ;;  %vm1827_vm3 = vcmp.ge.s32.totalorder %v72_v30, 1  ;;  %v1545_v42 = vld [vmem:[%s2050_s2 + $0x20] ss:$16 sps:$4 sm:$0xff]  }
  0x1e   :  { %259 = vmatpush1.bf16.msra.mxu0 %v1531_v14  ;;  %312 = vmatpush1.bf16.msra.mxu1 %v1532_v15  ;;  %v149_v31 = vpack.c.bf16 %v109_v27, %v123_v28  ;;  %v1823_v37 = vld [vmem:[%s2048_s0 + $0x18] sm:$0xff]  ;;  %v111_v44 = vsel %vm106_vm0, %v108_v24, %v110_v38  ;;  %v1553_v47 = vld [vmem:[%s2050_s2 + $0x44] ss:$16 sps:$4 sm:$0xff]   ;;  %v53_v49 = vadd.s32 24, %v1743_v6  ;;  %v65_v51 = vand.u32 15, %v51_v41  ;;  %s1671_s28 = smov [#allocation5]  }
  0x1f   :  { %260 = vmatprep.subr.bf16.mxu0 %v1533_v16  ;;  %313 = vmatprep.subr.bf16.mxu1 %v1535_v17  ;;  %v112_v39 = vrot.slane %v1823_v37, 7  ;;  %v1548_v43 = vld [vmem:[%s2050_s2 + $0x28] ss:$16 sps:$4 sm:$0xff]   ;;  %v125_v46 = vsel %vm1827_vm3, %v111_v44, 0.0  ;;  %v1556_v48 = vld [vmem:[%s2050_s2 + $0x4c] ss:$16 sps:$4 sm:$0xff]   ;;  %v398_v21 = vpack.c.bf16 %v1823_v37, %v1818_v36 }
  0x20   :  { %v129_v52 = vrot.slane %v1785_v20, 1  ;;  %v1551_v53 = vld [vmem:[%s2050_s2 + $0x40] ss:$16 sps:$4 sm:$0xff]   ;;  %v1554_v54 = vld [vmem:[%s2050_s2 + $0x48] ss:$16 sps:$4 sm:$0xff]   ;;  %v131_v55 = vrot.slane %v1818_v36, 1 }
  0x21   :  { %v113_v45 = vsel %vm106_vm0, %v110_v38, %v112_v39  ;;  %v1559_v56 = vld [vmem:[%s2050_s2 + $0x64] ss:$16 sps:$4 sm:$0xff]   ;;  %v1562_v57 = vld [vmem:[%s2050_s2 + $0x6c] ss:$16 sps:$4 sm:$0xff]   ;;  %vm127_vm4 = vcmask 1046528   ;;  %v79_v58 = vand.u32 15, %v53_v49 }
  0x22   :  { %261 = vmatpush1.bf16.msra.mxu0 %v1537_v22  ;;  %314 = vmatpush1.bf16.msra.mxu1 %v1538_v23  ;;  %v150_v50 = vpack.c.bf16 %v113_v45, %v125_v46  ;;  %v133_v59 = vrot.slane %v1823_v37, 1  ;;  %v1557_v60 = vld [vmem:[%s2050_s2 + $0x60] ss:$16 sps:$4 sm:$0xff]   ;;  %v1560_v61 = vld [vmem:[%s2050_s2 + $0x68] ss:$16 sps:$4 sm:$0xff]   ;;  %v132_v1 = vsel %vm127_vm4, %v129_v52, %v131_v55  ;;  %vm1881_vm5 = vcmp.le.s32.totalorder %v65_v51, 14 }
  0x23   :  { %501 = vmatprep.subr.bf16.mxu0 %v1541_v26  ;;  %554 = vmatprep.subr.bf16.mxu1 %v1544_v29  ;;  %v1565_v62 = vld [vmem:[#allocation2 + $0x4] ss:$16 sps:$4 sm:$0xff]   ;;  %v1568_v63 = vld [vmem:[#allocation2 + $0xc] ss:$16 sps:$4 sm:$0xff]   ;;  %vm1890_vm6 = vcmp.le.s32.totalorder %v79_v58, 14  ;;  %v128_v5 = vrot.slane %v1779_v18, 1 }
  0x24   :  { %v139_v3 = vsel %vm127_vm4, %v133_v59, 0.0  ;;  %v1563_v8 = vld [vmem:[#allocation2] ss:$16 sps:$4 sm:$0xff]   ;;  %v1566_v9 = vld [vmem:[#allocation2 + $0x8] ss:$16 sps:$4 sm:$0xff]   ;;  %v145_v10 = vsel %vm1881_vm5, %v132_v1, 0.0  ;;  %v134_v20 = vsel %vm127_vm4, %v131_v55, %v133_v59 }
  0x25   :  { %1339 = vmatmul.mubr.msk.bf16.vlgmr.msra.gmra.mrb[0].mxu0 %vm247_vm2, %v149_v31  ;;  %1341 = vmatmul.mubr.msk.bf16.vlgmr.msra.gmra.mrb[0].mxu1 %vm247_vm2, %v149_v31  ;;  %v1571_v11 = vld [vmem:[#allocation2 + $0x24] ss:$16 sps:$4 sm:$0xff]   ;;  %v1574_v12 = vld [vmem:[#allocation2 + $0x2c] ss:$16 sps:$4 sm:$0xff]   ;;  %v147_v13 = vsel %vm1890_vm6, %v139_v3, 0.0  ;;  %v130_v26 = vsel %vm127_vm4, %v128_v5, %v129_v52  ;;  %v363_v29 = vsub.s32 0, %v1743_v6 }
  0x26   :  { %502 = vmatpush1.bf16.msra.mxu0 %v1539_v32  ;;  %555 = vmatpush1.bf16.msra.mxu1 %v1542_v33  ;;  %v1569_v14 = vld [vmem:[#allocation2 + $0x20] ss:$16 sps:$4 sm:$0xff]   ;;  %v1572_v15 = vld [vmem:[#allocation2 + $0x28] ss:$16 sps:$4 sm:$0xff]   ;;  %v1577_v16 = vld [vmem:[#allocation2 + $0x44] ss:$16 sps:$4 sm:$0xff]   ;;  %v623_v27 = vpack.c.bf16 %v145_v10, %v130_v26  ;;  %v624_v28 = vpack.c.bf16 %v147_v13, %v134_v20 }
  0x27   :  { %503 = vmatprep.subr.bf16.mxu0 %v1547_v34  ;;  %556 = vmatprep.subr.bf16.mxu1 %v1550_v35  ;;  %v1580_v17 = vld [vmem:[#allocation2 + $0x4c] ss:$16 sps:$4 sm:$0xff]   ;;  %v1575_v18 = vld [vmem:[#allocation2 + $0x40] ss:$16 sps:$4 sm:$0xff]   ;;  %v1578_v19 = vld [vmem:[#allocation2 + $0x48] ss:$16 sps:$4 sm:$0xff]  }
  0x28   :  { %296 = vmatprep.mubr.bf16.mxu0 %v1670_v0  ;;  %349 = vmatprep.mubr.bf16.mxu1 %v1670_v0  ;;  %v1583_v22 = vld [vmem:[#allocation2 + $0x64] ss:$16 sps:$4 sm:$0xff]   ;;  %v1586_v23 = vld [vmem:[#allocation2 + $0x6c] ss:$16 sps:$4 sm:$0xff]   ;;  %v1581_v24 = vld [vmem:[#allocation2 + $0x60] ss:$16 sps:$4 sm:$0xff]  }
  0x29   :  { %v1584_v25 = vld [vmem:[#allocation2 + $0x68] ss:$16 sps:$4 sm:$0xff]   ;;  %v371_v30 = vsub.s32 2, %v1743_v6  ;;  %v148_v31 = vld [vmem:[%s2052_s4] sm:$0xf]  ;;  %v367_v32 = vsub.s32 1, %v1743_v6 }
  0x2a   :  { %504 = vmatpush1.bf16.msra.mxu0 %v1545_v42  ;;  %557 = vmatpush1.bf16.msra.mxu1 %v1548_v43  ;;  %v375_v33 = vsub.s32 3, %v1743_v6  ;;  %v364_v34 = vrot.slane %v148_v31, %v363_v29  ;;  %vm874_vm7 = vcmask 261120   ;;  %s1314_s29 = sshll.u32 %s1671_s28, 4  ;;  %s1315_s29 = int_to_ptr.vmem [resolvable:$true] %s1314_s29 }
  0x2b   :  { %505 = vmatprep.subr.bf16.mxu0 %v1553_v47  ;;  %558 = vmatprep.subr.bf16.mxu1 %v1556_v48  ;;  %v372_v35 = vrot.slane %v148_v31, %v371_v30  ;;  %v368_v36 = vrot.slane %v148_v31, %v367_v32  ;;  %v1587_v30 = vld [vmem:[%s2054_s6 + $0x40] sm:$0xff]   ;;  %s1641_s30 = scalar_lea.vmem %s1315_s29, 32  ;;  %p1646_p9 = scmp.lt.s32.totalorder %s1315_s29, %s1315_s29 }
  0x2c   :  { %v376_v37 = vrot.slane %v148_v31, %v375_v33  ;;  %v1589_v31 = vld [vmem:[%s2054_s6 + $0xc0] sm:$0xff]   ;;  %p1642_p8 = scmp.ne.s32.totalorder %s1315_s29, %s1641_s30  ;;  %p1647_p10 = scmp.lt.s32.totalorder %s1641_s30, %s1641_s30 }
  0x2d   :  { %1340 = vmatmul.mubr.msk.bf16.gmra.mrb[4].mxu0 %vm247_vm2, %v150_v50  ;;  %1342 = vmatmul.mubr.msk.bf16.gmra.mrb[4].mxu1 %vm247_vm2, %v150_v50  ;;  %v865_v32 = vld [vmem:[%s2053_s5] sm:$0x1] }
  0x2e   :  { %506 = vmatpush1.bf16.msra.mxu0 %v1551_v53  ;;  %559 = vmatpush1.bf16.msra.mxu1 %v1554_v54  ;;  %v1588_v33 = vld [vmem:[%s2054_s6] sm:$0xff]   ;;  %p1648_p11 = por %p1647_p10, %p1646_p9 }
  0x2f   :  { %507 = vmatprep.subr.bf16.mxu0 %v1559_v56  ;;  %560 = vmatprep.subr.bf16.mxu1 %v1562_v57 }
  0x30   :  { %533 = vmatprep.mubr.bf16.mxu0 %v1670_v0  ;;  %586 = vmatprep.mubr.bf16.mxu1 %v1670_v0  ;;  %p1649_p12 = pnand %p1648_p11, %p1642_p8 }
  0x32   :  { %508 = vmatpush1.bf16.msra.mxu0 %v1557_v60  ;;  %561 = vmatpush1.bf16.msra.mxu1 %v1560_v61 }
  0x33   :  { %727 = vmatprep.subr.bf16.mxu0 %v1565_v62  ;;  %780 = vmatprep.subr.bf16.mxu1 %v1568_v63 }
  0x35   :  { %1359 = vmatmul.mubr.msk.bf16.vlgmr.msra.gmra.mrb[0].mxu0 %vm247_vm2, %v397_v7  ;;  %1361 = vmatmul.mubr.msk.bf16.vlgmr.msra.gmra.mrb[0].mxu1 %vm247_vm2, %v397_v7 }
  0x36   :  { %728 = vmatpush1.bf16.msra.mxu0 %v1563_v8  ;;  %781 = vmatpush1.bf16.msra.mxu1 %v1566_v9 }
  0x37   :  { %729 = vmatprep.subr.bf16.mxu0 %v1571_v11  ;;  %782 = vmatprep.subr.bf16.mxu1 %v1574_v12 }
  0x38   :  { %543 = vmatprep.mubr.bf16.mxu0 %v1670_v0  ;;  %596 = vmatprep.mubr.bf16.mxu1 %v1670_v0 }
  0x3a   :  { %730 = vmatpush1.bf16.msra.mxu0 %v1569_v14  ;;  %783 = vmatpush1.bf16.msra.mxu1 %v1572_v15 }
  0x3b   :  { %731 = vmatprep.subr.bf16.mxu0 %v1577_v16  ;;  %784 = vmatprep.subr.bf16.mxu1 %v1580_v17 }
  0x3d   :  { %1360 = vmatmul.mubr.msk.bf16.gmra.mrb[4].mxu0 %vm247_vm2, %v398_v21  ;;  %1362 = vmatmul.mubr.msk.bf16.gmra.mrb[4].mxu1 %vm247_vm2, %v398_v21 }
  0x3e   :  { %732 = vmatpush1.bf16.msra.mxu0 %v1575_v18  ;;  %785 = vmatpush1.bf16.msra.mxu1 %v1578_v19 }
  0x3f   :  { %733 = vmatprep.subr.bf16.mxu0 %v1583_v22  ;;  %786 = vmatprep.subr.bf16.mxu1 %v1586_v23 }
  0x40   :  { %759 = vmatprep.mubr.bf16.mxu0 %v1670_v0  ;;  %812 = vmatprep.mubr.bf16.mxu1 %v1670_v0 }
  0x42   :  { %734 = vmatpush1.bf16.msra.mxu0 %v1581_v24  ;;  %787 = vmatpush1.bf16.msra.mxu1 %v1584_v25 }
  0x45   :  { %1379 = vmatmul.mubr.msk.bf16.vlgmr.msra.gmra.mrb[0].mxu0 %vm247_vm2, %v623_v27  ;;  %1381 = vmatmul.mubr.msk.bf16.vlgmr.msra.gmra.mrb[0].mxu1 %vm247_vm2, %v623_v27 }
  0x46   :  { %769 = vmatprep.mubr.bf16.mxu0 %v1670_v0  ;;  %822 = vmatprep.mubr.bf16.mxu1 %v1670_v0 }
  0x4d   :  { %1380 = vmatmul.mubr.msk.bf16.gmra.mrb[4].mxu0 %vm247_vm2, %v624_v28  ;;  %1382 = vmatmul.mubr.msk.bf16.gmra.mrb[4].mxu1 %vm247_vm2, %v624_v28 }
  0x4e   :  { %910 = vmatprep.mubr.bf16.mxu0 %v1670_v0  ;;  %951 = vmatprep.mubr.bf16.mxu1 %v1670_v0 }
 0x118   :  { %v761_v38 = vpop.f32.mrb[0].mxu0  ;;  %v814_v39 = vpop.f32.mrb[0].mxu1 }
 0x119   :  { %v1462_v40 = vadd.f32 %v761_v38, %v364_v34  ;;  %v1470_v0 = vadd.f32 %v814_v39, %v372_v35  ;;  %v763_v41 = vpop.f32.mrb[1].mxu0  ;;  %v816_v42 = vpop.f32.mrb[1].mxu1  ;;  %v1594_v38 = vld [vmem:[%s2054_s6 + $0x88] sm:$0xff]   ;;  %v1595_v39 = vld [vmem:[%s2054_s6 + $0x50] sm:$0xff]  }
 0x11a   :  { %v1463_v43 = vadd.f32 %v763_v41, %v368_v36  ;;  %v1471_v44 = vadd.f32 %v816_v42, %v376_v37  ;;  %v765_v45 = vpop.f32.mrb[2].mxu0  ;;  %v818_v46 = vpop.f32.mrb[2].mxu1  ;;  %v1598_v41 = vld [vmem:[%s2054_s6 + $0x90] sm:$0xff]   ;;  %v1599_v42 = vld [vmem:[%s2054_s6 + $0x58] sm:$0xff]  }
 0x11b   :  { %v1464_v47 = vadd.f32 %v765_v45, %v364_v34  ;;  %v1472_v48 = vadd.f32 %v818_v46, %v372_v35  ;;  %v767_v49 = vpop.f32.mrb[3].mxu0  ;;  %v820_v50 = vpop.f32.mrb[3].mxu1  ;;  %v849_v52 = vmax.f32 %v1462_v40, 0.0  ;;  %v851_v53 = vmax.f32 %v1470_v0, 0.0  ;;  %v1597_v40 = vld [vmem:[%s2054_s6 + $0xd0] sm:$0xff]   ;;  %v1602_v45 = vld [vmem:[%s2054_s6 + $0x98] sm:$0xff]  }
 0x11c   :  { %v1465_v51 = vadd.f32 %v767_v49, %v368_v36  ;;  %v1473_v6 = vadd.f32 %v820_v50, %v376_v37  ;;  %v850_v56 = vmax.f32 %v1463_v43, 0.0  ;;  %v852_v57 = vmax.f32 %v1471_v44, 0.0  ;;  %v1596_v0 = vld [vmem:[%s2054_s6 + $0x10] sm:$0xff]   ;;  %v1601_v43 = vld [vmem:[%s2054_s6 + $0xd8] sm:$0xff]   ;;  %v1603_v46 = vld [vmem:[%s2054_s6 + $0x60] sm:$0xff]  }
 0x11d   :  { %v853_v54 = vmax.f32 %v1464_v47, 0.0  ;;  %v855_v55 = vmax.f32 %v1472_v48, 0.0  ;;  %v1600_v44 = vld [vmem:[%s2054_s6 + $0x18] sm:$0xff]   ;;  %v1605_v47 = vld [vmem:[%s2054_s6 + $0xe0] sm:$0xff]   ;;  %v1607_v50 = vld [vmem:[%s2054_s6 + $0x68] sm:$0xff]  }
 0x11e   :  { %v854_v58 = vmax.f32 %v1465_v51, 0.0  ;;  %v856_v59 = vmax.f32 %v1473_v6, 0.0  ;;  %v1604_v48 = vld [vmem:[%s2054_s6 + $0x20] sm:$0xff]   ;;  %v1609_v51 = vld [vmem:[%s2054_s6 + $0xe8] sm:$0xff]  }
 0x11f   :  { %v866_v60 = vpack.c.bf16 %v853_v54, %v849_v52  ;;  %v868_v61 = vpack.c.bf16 %v855_v55, %v851_v53  ;;  %v1606_v49 = vld [vmem:[%s2054_s6 + $0xa0] sm:$0xff]   ;;  %v1608_v6 = vld [vmem:[%s2054_s6 + $0x28] sm:$0xff]   ;;  %v1611_v53 = vld [vmem:[%s2054_s6 + $0x70] sm:$0xff]  }
 0x120   :  { %v867_v62 = vpack.c.bf16 %v854_v58, %v850_v56  ;;  %v869_v63 = vpack.c.bf16 %v856_v59, %v852_v57  ;;  %v771_v1 = vpop.f32.mrb[4].mxu0  ;;  %v824_v2 = vpop.f32.mrb[4].mxu1  ;;  %v1610_v52 = vld [vmem:[%s2054_s6 + $0xa8] sm:$0xff]   ;;  %v1613_v54 = vld [vmem:[%s2054_s6 + $0xf0] sm:$0xff]   ;;  %v1615_v57 = vld [vmem:[%s2054_s6 + $0x78] sm:$0xff]  }
 0x121   :  { %v1466_v3 = vadd.f32 %v771_v1, %v364_v34  ;;  %v1474_v4 = vadd.f32 %v824_v2, %v372_v35  ;;  %v773_v5 = vpop.f32.mrb[5].mxu0  ;;  %v826_v7 = vpop.f32.mrb[5].mxu1  ;;  %v1612_v55 = vld [vmem:[%s2054_s6 + $0x30] sm:$0xff]   ;;  %v1617_v58 = vld [vmem:[%s2054_s6 + $0xf8] sm:$0xff]  }
 0x122   :  { %v1467_v8 = vadd.f32 %v773_v5, %v368_v36  ;;  %v1475_v9 = vadd.f32 %v826_v7, %v376_v37  ;;  %v775_v10 = vpop.f32.mrb[6].mxu0  ;;  %v828_v11 = vpop.f32.mrb[6].mxu1  ;;  %878 = vmatprep.subr.bf16.mxu0 %v867_v62  ;;  %919 = vmatprep.subr.bf16.mxu1 %v869_v63  ;;  %v1614_v56 = vld [vmem:[%s2054_s6 + $0xb0] sm:$0xff]   ;;  %v1616_v59 = vld [vmem:[%s2054_s6 + $0x38] sm:$0xff]  }
 0x123   :  { %v1468_v12 = vadd.f32 %v775_v10, %v364_v34  ;;  %v1476_v13 = vadd.f32 %v828_v11, %v372_v35  ;;  %v777_v14 = vpop.f32.mrb[7].mxu0  ;;  %v830_v15 = vpop.f32.mrb[7].mxu1  ;;  %879 = vmatpush1.bf16.msra.mxu0 %v866_v60  ;;  %920 = vmatpush1.bf16.msra.mxu1 %v868_v61  ;;  %v857_v18 = vmax.f32 %v1466_v3, 0.0  ;;  %v859_v19 = vmax.f32 %v1474_v4, 0.0  ;;  %v1590_v34 = vld [vmem:[%s2054_s6 + $0x80] sm:$0xff]   ;;  %v1591_v35 = vld [vmem:[%s2054_s6 + $0x48] sm:$0xff]  }
 0x124   :  { %v1469_v16 = vadd.f32 %v777_v14, %v368_v36  ;;  %v1477_v17 = vadd.f32 %v830_v15, %v376_v37  ;;  %v858_v23 = vmax.f32 %v1467_v8, 0.0  ;;  %v860_v24 = vmax.f32 %v1475_v9, 0.0  ;;  %v1593_v36 = vld [vmem:[%s2054_s6 + $0xc8] sm:$0xff]   ;;  %v1618_v60 = vld [vmem:[%s2054_s6 + $0xb8] sm:$0xff]  }
 0x125   :  { %v861_v21 = vmax.f32 %v1468_v12, 0.0  ;;  %v863_v22 = vmax.f32 %v1476_v13, 0.0  ;;  %v1592_v37 = vld [vmem:[%s2054_s6 + $0x8] sm:$0xff]   ;;  %v1385_v13 = vld [vmem:[%s2055_s7] ss:$0 sm:$0xff] }
 0x126   :  { %v862_v25 = vmax.f32 %v1469_v16, 0.0  ;;  %v864_v26 = vmax.f32 %v1477_v17, 0.0 }
 0x127   :  { %v870_v27 = vpack.c.bf16 %v861_v21, %v857_v18  ;;  %v872_v20 = vpack.c.bf16 %v863_v22, %v859_v19 }
 0x128   :  { %v871_v28 = vpack.c.bf16 %v862_v25, %v858_v23  ;;  %v873_v29 = vpack.c.bf16 %v864_v26, %v860_v24 }
 0x12a   :  { %880 = vmatprep.subr.bf16.mxu0 %v871_v28  ;;  %921 = vmatprep.subr.bf16.mxu1 %v873_v29 }
 0x12b   :  { %881 = vmatpush1.bf16.msra.mxu0 %v870_v27  ;;  %922 = vmatpush1.bf16.msra.mxu1 %v872_v20 }
 0x12c   :  { %1418 = vmatprep.subr.bf16.mxu0 %v1587_v30  ;;  %1440 = vmatprep.subr.bf16.mxu1 %v1589_v31 }
 0x12e   :  { %1383 = vmatmul.mubr.msk.bf16.vlgmr.msra.gmra.mrb[8].mxu0 %vm874_vm7, %v865_v32  ;;  %1384 = vmatmul.mubr.msk.bf16.vlgmr.msra.gmra.mrb[8].mxu1 %vm874_vm7, %v865_v32 }
 0x12f   :  { %1419 = vmatpush3.bf16.msra.mxu0 %v1588_v33  ;;  %1441 = vmatpush3.bf16.msra.mxu1 %v1590_v34 }
 0x130   :  { %1420 = vmatprep.subr.bf16.mxu0 %v1591_v35  ;;  %1442 = vmatprep.subr.bf16.mxu1 %v1593_v36 }
 0x133   :  { %1421 = vmatpush3.bf16.msra.mxu0 %v1592_v37  ;;  %1443 = vmatpush3.bf16.msra.mxu1 %v1594_v38 }
 0x134   :  { %1422 = vmatprep.subr.bf16.mxu0 %v1595_v39  ;;  %1444 = vmatprep.subr.bf16.mxu1 %v1597_v40 }
 0x137   :  { %1423 = vmatpush3.bf16.msra.mxu0 %v1596_v0  ;;  %1445 = vmatpush3.bf16.msra.mxu1 %v1598_v41 }
 0x138   :  { %1424 = vmatprep.subr.bf16.mxu0 %v1599_v42  ;;  %1446 = vmatprep.subr.bf16.mxu1 %v1601_v43 }
 0x13b   :  { %1425 = vmatpush3.bf16.msra.mxu0 %v1600_v44  ;;  %1447 = vmatpush3.bf16.msra.mxu1 %v1602_v45 }
 0x13c   :  { %1426 = vmatprep.subr.bf16.mxu0 %v1603_v46  ;;  %1448 = vmatprep.subr.bf16.mxu1 %v1605_v47 }
 0x13f   :  { %1427 = vmatpush3.bf16.msra.mxu0 %v1604_v48  ;;  %1449 = vmatpush3.bf16.msra.mxu1 %v1606_v49 }
 0x140   :  { %1428 = vmatprep.subr.bf16.mxu0 %v1607_v50  ;;  %1450 = vmatprep.subr.bf16.mxu1 %v1609_v51 }
 0x143   :  { %1429 = vmatpush3.bf16.msra.mxu0 %v1608_v6  ;;  %1451 = vmatpush3.bf16.msra.mxu1 %v1610_v52 }
 0x144   :  { %1430 = vmatprep.subr.bf16.mxu0 %v1611_v53  ;;  %1452 = vmatprep.subr.bf16.mxu1 %v1613_v54 }
 0x147   :  { %1431 = vmatpush3.bf16.msra.mxu0 %v1612_v55  ;;  %1453 = vmatpush3.bf16.msra.mxu1 %v1614_v56 }
 0x148   :  { %1432 = vmatprep.subr.bf16.mxu0 %v1615_v57  ;;  %1454 = vmatprep.subr.bf16.mxu1 %v1617_v58 }
 0x14b   :  { %1433 = vmatpush3.bf16.msra.mxu0 %v1616_v59  ;;  %1455 = vmatpush3.bf16.msra.mxu1 %v1618_v60 }
 0x201   :  { %v912_v61 = vpop.f32.mrb[8].mxu0  ;;  %v953_v62 = vpop.f32.mrb[8].mxu1 }
 0x202   :  { %v914_v63 = vpop.f32.mrb[9].mxu0  ;;  %v962_v1 = vpack.c.bf16 %v953_v62, %v953_v62  ;;  %v955_v2 = vpop.f32.mrb[9].mxu1  ;;  %v960_v8 = vpack.c.bf16 %v912_v61, %v912_v61 }
 0x203   :  { %v961_v3 = vpack.c.bf16 %v914_v63, %v914_v63  ;;  %v963_v4 = vpack.c.bf16 %v955_v2, %v955_v2  ;;  %v916_v5 = vpop.f32.mrb[10].mxu0  ;;  %v957_v7 = vpop.f32.mrb[10].mxu1 }
 0x204   :  { %v917_v9 = vpop.f32.mrb[11].mxu0  ;;  %v958_v10 = vpop.f32.mrb[11].mxu1 }
 0x205   :  { %1259 = vmatprep.mubr.bf16.mxu0 %v961_v3  ;;  %1299 = vmatprep.mubr.bf16.mxu1 %v963_v4 }
 0x206   :  { %1260 = vmatmul.mubr.bf16.vlgmr.msra.gmra.mrb[12].mxu0 %v960_v8  ;;  %1300 = vmatmul.mubr.bf16.vlgmr.msra.gmra.mrb[12].mxu1 %v962_v1 }
 0x2d9   :  { %v1434_v11 = vpop.f32.mrb[12].mxu0  ;;  %v1456_v12 = vpop.f32.mrb[12].mxu1 }
 0x2da   :  { %v1435_v14 = vpop.f32.mrb[13].mxu0  ;;  %v1457_v15 = vpop.f32.mrb[13].mxu1 }
 0x2db   :  { %v1436_v16 = vadd.f32 %v1435_v14, %v1434_v11  ;;  %v1437_v17 = vpop.f32.mrb[14].mxu0  ;;  %v1458_v18 = vadd.f32 %v1457_v15, %v1456_v12  ;;  %v1459_v19 = vpop.f32.mrb[14].mxu1 }
 0x2dc   :  { %v1438_v21 = vpop.f32.mrb[15].mxu0  ;;  %v1460_v22 = vpop.f32.mrb[15].mxu1 }
 0x2dd   :  { %v1262_v23 = vadd.f32 %v1436_v16, %v1385_v13 }
 0x2df   :  { %v1302_v24 = vadd.f32 %v1458_v18, %v1262_v23 }
 0x2e1   :  { %1307 = vst [vmem:[#allocation5] sm:$0x3] %v1302_v24 }
 0x2e2   :  { %1652 = shalt.err (!%p1649_p12)
}
 0x2e3   :  { %s1653_s9 = scalar_lea.hbm %s2056_s8, 32 }
 0x2e4   :  { %p1654_p13 = scmp.ne.s32.totalorder %s2056_s8, %s1653_s9  ;;  %p1657_p0 = scmp.lt.u32.totalorder %s1653_s9, %s2056_s8 }
 0x2e6   :  { %p1659_p1 = pnand %p1657_p0, %p1654_p13 }
 0x2e8   :  { %1662 = shalt.err (!%p1659_p1)
}
 0x2e9   :  { %1317 = dma.vmem_to_hbm [thread:$0]  %s1315_s29, 32, %s2056_s8, [#allocation4]  }
 0x2ea   :  { %1665 = dma.done.wait [#allocation4], 32  }
 0x2eb   :  { %1666 = vsyncadd [#allocation4], 4294967264 }
 0x2ec   :  { %1321 = vsyncpa [#allocation3], 1 }
 0x2ed   :  { %1322 = vsyncpa [#allocation4], 1 }

</bundles_post_ra>
